<compile_context>
chip_gen: v7x
topology: tpu7x:2x2x1
jax: 0.10.0
libtpu: 0.0.40
codegen_flags: <defaults>
</compile_context>

<pallas_src>
import functools

import jax
import jax.numpy as jnp
from jax.experimental import pallas as pl
from jax.experimental.pallas import tpu as pltpu

TC = 128        # lane width
SUB_ROWS = 512  # rows processed per inner-loop iteration (bounded vreg pressure)


def _device_config():
    """(ncores, block_bytes_per_input_per_buffer, vmem_limit_bytes)."""
    kind = ""
    try:
        kind = jax.devices()[0].device_kind.lower()
    except Exception:
        pass
    is_v7 = "7" in kind  # v7x: 2 TensorCores per chip, 64 MiB VMEM per TC
    ncores = 2 if is_v7 else 1
    blk_bytes = (4 << 20) if is_v7 else (8 << 20)
    vmem_limit = (48 << 20) if is_v7 else (64 << 20)
    return ncores, blk_bytes, vmem_limit


def _dice_kernel(x_ref, y_ref, o_ref, *, n_rows, tr, half, sub):
    """Accumulate lane-wise partial sums of (x*y) and (x+y) into o_ref.

    o_ref is an (8, TC) f32 block resident across the inner ("arbitrary")
    grid axis; row 0 holds the intersection partial, row 1 the combined-sum
    partial (rows 2..7 stay zero).
    """
    c = pl.program_id(0)   # core split ("parallel")
    i = pl.program_id(1)   # sequential row-block walk ("arbitrary")

    @pl.when(i == 0)
    def _init():
        o_ref[...] = jnp.zeros_like(o_ref)

    # Unclamped global first row of this step.  The index_map clamps the DMA
    # so it never re-fetches / reads out of range; clamped duplicate blocks
    # have row0 >= n_rows and are fully masked on the tail path below.
    row0 = (c * half + i) * tr

    n_sub = tr // sub
    rem = tr - n_sub * sub

    def tile_sums(masked):
        def chunk(off, rows):
            xs = x_ref[pl.ds(off, rows), :].astype(jnp.float32)
            ys = y_ref[pl.ds(off, rows), :].astype(jnp.float32)
            if masked:
                # Mask x and y BEFORE the multiply/add: garbage rows past
                # n_rows may contain NaN/Inf.
                ridx = jax.lax.broadcasted_iota(jnp.int32, (rows, TC), 0)
                valid = (row0 + off + ridx) < n_rows
                xs = jnp.where(valid, xs, 0.0)
                ys = jnp.where(valid, ys, 0.0)
            return (jnp.sum(xs * ys, axis=0, keepdims=True),
                    jnp.sum(xs + ys, axis=0, keepdims=True))

        def body(s, carry):
            acc_i, acc_t = carry
            off = pl.multiple_of(s * sub, sub)
            pi, pt = chunk(off, sub)
            return acc_i + pi, acc_t + pt

        zero = jnp.zeros((1, TC), jnp.float32)
        acc_i, acc_t = jax.lax.fori_loop(0, n_sub, body, (zero, zero))
        if rem:  # static remainder chunk (tr not a multiple of sub)
            pi, pt = chunk(n_sub * sub, rem)
            acc_i, acc_t = acc_i + pi, acc_t + pt
        return acc_i, acc_t

    interior = (row0 + tr) <= n_rows

    @pl.when(interior)
    def _fast():  # unmasked fast path for interior blocks
        acc_i, acc_t = tile_sums(masked=False)
        o_ref[0:1, :] += acc_i
        o_ref[1:2, :] += acc_t

    @pl.when(jnp.logical_not(interior))
    def _tail():  # tail / clamped-duplicate blocks: masked
        acc_i, acc_t = tile_sums(masked=True)
        o_ref[0:1, :] += acc_i
        o_ref[1:2, :] += acc_t


def dice_loss(inputs, targets, smooth=1.0):
    """Pallas implementation of DiceLoss.forward. Returns a scalar f32."""
    x = jnp.ravel(inputs)    # keep original dtype: fewer HBM bytes for bf16/int8
    y = jnp.ravel(targets)
    n = int(x.shape[0])
    if n == 0:
        return jnp.float32(0.0)   # dice = smooth / smooth = 1

    # TODO(synk): for n % 128 != 0 this pad costs an extra HBM pass over both
    # inputs; could be replaced by an in-kernel flat-index tail mask with a
    # manually DMA'd ragged tail.  Never taken for lane-aligned sizes.
    if n % TC != 0:
        pad = TC - n % TC
        x = jnp.pad(x, (0, pad))
        y = jnp.pad(y, (0, pad))
    n_rows = x.shape[0] // TC
    x2 = x.reshape(n_rows, TC)
    y2 = y.reshape(n_rows, TC)

    ncores, blk_bytes, vmem_limit = _device_config()

    # Dtype-scaled row-block size: target blk_bytes of DMA per input per
    # buffer (2 inputs x 2 buffers stays well inside the per-generation VMEM
    # budget above), rounded to a multiple of 8 sublanes.
    itemsize = max(x2.dtype.itemsize, y2.dtype.itemsize)
    max_tr = max(8, (blk_bytes // (TC * itemsize)) // 8 * 8)
    tr = n_rows if n_rows <= max_tr else max_tr
    nblocks = pl.cdiv(n_rows, tr)
    if nblocks < ncores:
        ncores = 1           # nothing to split; avoid a wasted masked pass
    half = pl.cdiv(nblocks, ncores)   # row-blocks per core
    sub = min(SUB_ROWS, tr)

    def in_map(c, i):
        # Clamp to this core's OWN last valid block: an overflow step maps to
        # the block already resident from the previous step, so the pipeline
        # skips the re-fetch entirely (it is fully masked in-kernel anyway).
        last = jnp.minimum((c + 1) * half, nblocks) - 1
        return (jnp.minimum(c * half + i, last), 0)

    kernel = functools.partial(_dice_kernel, n_rows=n_rows, tr=tr,
                               half=half, sub=sub)

    partials = pl.pallas_call(
        kernel,
        out_shape=jax.ShapeDtypeStruct((ncores * 8, TC), jnp.float32),
        grid_spec=pltpu.PrefetchScalarGridSpec(
            num_scalar_prefetch=0,
            grid=(ncores, half),
            in_specs=[
                pl.BlockSpec((tr, TC), in_map),
                pl.BlockSpec((tr, TC), in_map),
            ],
            out_specs=pl.BlockSpec((8, TC), lambda c, i: (c, 0)),
        ),
        compiler_params=pltpu.CompilerParams(
            dimension_semantics=("parallel", "arbitrary"),
            vmem_limit_bytes=vmem_limit,
        ),
    )(x2, y2)

    p = partials.reshape(ncores, 8, TC)
    intersection = jnp.sum(p[:, 0, :])
    total = jnp.sum(p[:, 1, :])          # sum(inputs) + sum(targets)
    dice = (2.0 * intersection + smooth) / (total + smooth)
    return (1.0 - dice).astype(jnp.float32)


if __name__ == "__main__":
    key = jax.random.PRNGKey(0)
    k1, k2 = jax.random.split(key)

    # Segmentation-style inputs: probabilities vs. binary targets, NCHW.
    shape = (2, 4, 16, 16)
    inputs = jax.nn.sigmoid(jax.random.normal(k1, shape, dtype=jnp.float32))
    targets = (jax.random.uniform(k2, shape) > 0.5).astype(jnp.float32)

    loss = dice_loss(inputs, targets, smooth=1.0)
    loss = jax.block_until_ready(loss)

    # Reference check in plain JAX (same math as the PyTorch module).
    xi = inputs.reshape(-1)
    ti = targets.reshape(-1)
    inter = jnp.sum(xi * ti)
    ref = 1.0 - (2.0 * inter + 1.0) / (jnp.sum(xi) + jnp.sum(ti) + 1.0)

    assert jnp.allclose(loss, ref, rtol=1e-5, atol=1e-5), (loss, ref)
    print("KERNEL_OK")
</pallas_src>

<mosaic_0001>
module attributes {stable_mosaic.version = 11 : i64} {
  func.func @_dice_kernel(%arg0: i32, %arg1: i32, %arg2: memref<16x128xf32, #tpu.memory_space<vmem>>, %arg3: memref<16x128xf32, #tpu.memory_space<vmem>>, %arg4: memref<8x128xf32, #tpu.memory_space<vmem>>) attributes {dimension_semantics = [#tpu.dimension_semantics<parallel>, #tpu.dimension_semantics<arbitrary>], iteration_bounds = array<i64: 1, 1>, scalar_prefetch = 0 : i64, scratch_operands = 0 : i64, tpu.core_type = #tpu.core_type<tc>, window_params = [{transform_indices = @transform_0, window_bounds = array<i64: 16, 128>}, {transform_indices = @transform_1, window_bounds = array<i64: 16, 128>}, {transform_indices = @transform_2, window_bounds = array<i64: 8, 128>}]} {
    %c0_i32 = arith.constant 0 : i32
    %0 = arith.cmpi eq, %arg1, %c0_i32 : i32
    %1 = arith.extui %0 : i1 to i32
    %c0_i32_0 = arith.constant 0 : i32
    %2 = arith.cmpi ne, %1, %c0_i32_0 : i32
    scf.if %2 {
      %cst = arith.constant 0.000000e+00 : f32
      %13 = vector.broadcast %cst : f32 to vector<8x128xf32>
      %c0 = arith.constant 0 : index
      %c0_5 = arith.constant 0 : index
      %14 = vector.load %arg4[%c0, %c0_5] : memref<8x128xf32, #tpu.memory_space<vmem>>, vector<8x128xf32>
      tpu.vector_store %arg4[%c0, %c0_5], %13 {strides = array<i32>} : memref<8x128xf32, #tpu.memory_space<vmem>>, vector<8x128xf32>,
    } else {
    }
    %c1_i32 = arith.constant 1 : i32
    %3 = arith.muli %arg0, %c1_i32 : i32
    %4 = arith.addi %3, %arg1 : i32
    %c16_i32 = arith.constant 16 : i32
    %5 = arith.muli %4, %c16_i32 : i32
    %c16_i32_1 = arith.constant 16 : i32
    %6 = arith.addi %5, %c16_i32_1 : i32
    %c16_i32_2 = arith.constant 16 : i32
    %7 = arith.cmpi sle, %6, %c16_i32_2 : i32
    %8 = arith.extui %7 : i1 to i32
    %c0_i32_3 = arith.constant 0 : i32
    %9 = arith.cmpi ne, %8, %c0_i32_3 : i32
    scf.if %9 {
      %cst = arith.constant 0.000000e+00 : f32
      %13 = vector.broadcast %cst : f32 to vector<1x128xf32>
      %c0_i32_5 = arith.constant 0 : i32
      %c16_i32_6 = arith.constant 16 : i32
      %14 = arith.muli %c0_i32_5, %c16_i32_6 : i32
      %15 = tpu.assume_multiple %14, 16 : i32
      %16 = arith.index_cast %15 : i32 to index
      %c0 = arith.constant 0 : index
      %17 = vector.load %arg2[%16, %c0] : memref<16x128xf32, #tpu.memory_space<vmem>>, vector<16x128xf32>
      %18 = arith.index_cast %15 : i32 to index
      %c0_7 = arith.constant 0 : index
      %19 = vector.load %arg3[%18, %c0_7] : memref<16x128xf32, #tpu.memory_space<vmem>>, vector<16x128xf32>
      %20 = arith.mulf %17, %19 : vector<16x128xf32>
      %cst_8 = arith.constant dense<0.000000e+00> : vector<128xf32>
      %21 = vector.multi_reduction <add>, %20, %cst_8 [0] : vector<16x128xf32> to vector<128xf32>
      %22 = vector.shape_cast %21 : vector<128xf32> to vector<1x128xf32>
      %23 = arith.addf %17, %19 : vector<16x128xf32>
      %cst_9 = arith.constant dense<0.000000e+00> : vector<128xf32>
      %24 = vector.multi_reduction <add>, %23, %cst_9 [0] : vector<16x128xf32> to vector<128xf32>
      %25 = vector.shape_cast %24 : vector<128xf32> to vector<1x128xf32>
      %26 = arith.addf %13, %22 : vector<1x128xf32>
      %27 = arith.addf %13, %25 : vector<1x128xf32>
      %c1_i32_10 = arith.constant 1 : i32
      %c0_11 = arith.constant 0 : index
      %c0_12 = arith.constant 0 : index
      %28 = vector.load %arg4[%c0_11, %c0_12] : memref<8x128xf32, #tpu.memory_space<vmem>>, vector<1x128xf32>
      %29 = arith.addf %28, %26 : vector<1x128xf32>
      %c0_13 = arith.constant 0 : index
      %c0_14 = arith.constant 0 : index
      %30 = vector.load %arg4[%c0_13, %c0_14] : memref<8x128xf32, #tpu.memory_space<vmem>>, vector<1x128xf32>
      tpu.vector_store %arg4[%c0_13, %c0_14], %29 {strides = array<i32>} : memref<8x128xf32, #tpu.memory_space<vmem>>, vector<1x128xf32>,
      %c1 = arith.constant 1 : index
      %c0_15 = arith.constant 0 : index
      %31 = vector.load %arg4[%c1, %c0_15] : memref<8x128xf32, #tpu.memory_space<vmem>>, vector<1x128xf32>
      %32 = arith.addf %31, %27 : vector<1x128xf32>
      %c1_16 = arith.constant 1 : index
      %c0_17 = arith.constant 0 : index
      %33 = vector.load %arg4[%c1_16, %c0_17] : memref<8x128xf32, #tpu.memory_space<vmem>>, vector<1x128xf32>
      tpu.vector_store %arg4[%c1_16, %c0_17], %32 {strides = array<i32>} : memref<8x128xf32, #tpu.memory_space<vmem>>, vector<1x128xf32>,
    } else {
    }
    %true = arith.constant true
    %10 = arith.xori %7, %true : i1
    %11 = arith.extui %10 : i1 to i32
    %c0_i32_4 = arith.constant 0 : i32
    %12 = arith.cmpi ne, %11, %c0_i32_4 : i32
    scf.if %12 {
      %cst = arith.constant 0.000000e+00 : f32
      %13 = vector.broadcast %cst : f32 to vector<1x128xf32>
      %c0_i32_5 = arith.constant 0 : i32
      %c16_i32_6 = arith.constant 16 : i32
      %14 = arith.muli %c0_i32_5, %c16_i32_6 : i32
      %15 = tpu.assume_multiple %14, 16 : i32
      %16 = arith.index_cast %15 : i32 to index
      %c0 = arith.constant 0 : index
      %17 = vector.load %arg2[%16, %c0] : memref<16x128xf32, #tpu.memory_space<vmem>>, vector<16x128xf32>
      %18 = arith.index_cast %15 : i32 to index
      %c0_7 = arith.constant 0 : index
      %19 = vector.load %arg3[%18, %c0_7] : memref<16x128xf32, #tpu.memory_space<vmem>>, vector<16x128xf32>
      %20 = tpu.iota {dimensions = array<i32: 0>} : vector<16x128xi32>
      %21 = arith.addi %5, %15 : i32
      %22 = vector.broadcast %21 : i32 to vector<16x128xi32>
      %23 = arith.addi %22, %20 : vector<16x128xi32>
      %c16_i32_8 = arith.constant 16 : i32
      %24 = vector.broadcast %c16_i32_8 : i32 to vector<16x128xi32>
      %25 = arith.cmpi slt, %23, %24 : vector<16x128xi32>
      %cst_9 = arith.constant 0.000000e+00 : f32
      %26 = vector.broadcast %cst_9 : f32 to vector<16x128xf32>
      %27 = arith.select %25, %17, %26 : vector<16x128xi1>, vector<16x128xf32>
      %cst_10 = arith.constant 0.000000e+00 : f32
      %28 = vector.broadcast %cst_10 : f32 to vector<16x128xf32>
      %29 = arith.select %25, %19, %28 : vector<16x128xi1>, vector<16x128xf32>
      %30 = arith.mulf %27, %29 : vector<16x128xf32>
      %cst_11 = arith.constant dense<0.000000e+00> : vector<128xf32>
      %31 = vector.multi_reduction <add>, %30, %cst_11 [0] : vector<16x128xf32> to vector<128xf32>
      %32 = vector.shape_cast %31 : vector<128xf32> to vector<1x128xf32>
      %33 = arith.addf %27, %29 : vector<16x128xf32>
      %cst_12 = arith.constant dense<0.000000e+00> : vector<128xf32>
      %34 = vector.multi_reduction <add>, %33, %cst_12 [0] : vector<16x128xf32> to vector<128xf32>
      %35 = vector.shape_cast %34 : vector<128xf32> to vector<1x128xf32>
      %36 = arith.addf %13, %32 : vector<1x128xf32>
      %37 = arith.addf %13, %35 : vector<1x128xf32>
      %c1_i32_13 = arith.constant 1 : i32
      %c0_14 = arith.constant 0 : index
      %c0_15 = arith.constant 0 : index
      %38 = vector.load %arg4[%c0_14, %c0_15] : memref<8x128xf32, #tpu.memory_space<vmem>>, vector<1x128xf32>
      %39 = arith.addf %38, %36 : vector<1x128xf32>
      %c0_16 = arith.constant 0 : index
      %c0_17 = arith.constant 0 : index
      %40 = vector.load %arg4[%c0_16, %c0_17] : memref<8x128xf32, #tpu.memory_space<vmem>>, vector<1x128xf32>
      tpu.vector_store %arg4[%c0_16, %c0_17], %39 {strides = array<i32>} : memref<8x128xf32, #tpu.memory_space<vmem>>, vector<1x128xf32>,
      %c1 = arith.constant 1 : index
      %c0_18 = arith.constant 0 : index
      %41 = vector.load %arg4[%c1, %c0_18] : memref<8x128xf32, #tpu.memory_space<vmem>>, vector<1x128xf32>
      %42 = arith.addf %41, %37 : vector<1x128xf32>
      %c1_19 = arith.constant 1 : index
      %c0_20 = arith.constant 0 : index
      %43 = vector.load %arg4[%c1_19, %c0_20] : memref<8x128xf32, #tpu.memory_space<vmem>>, vector<1x128xf32>
      tpu.vector_store %arg4[%c1_19, %c0_20], %42 {strides = array<i32>} : memref<8x128xf32, #tpu.memory_space<vmem>>, vector<1x128xf32>,
    } else {
    }
    return
  }
  func.func @transform_0(%arg0: i32, %arg1: i32) -> (i32, i32) {
    %c1_i32 = arith.constant 1 : i32
    %0 = arith.addi %arg0, %c1_i32 : i32
    %c1_i32_0 = arith.constant 1 : i32
    %1 = arith.muli %0, %c1_i32_0 : i32
    %c1_i32_1 = arith.constant 1 : i32
    %2 = arith.minsi %1, %c1_i32_1 : i32
    %c1_i32_2 = arith.constant 1 : i32
    %3 = arith.subi %2, %c1_i32_2 : i32
    %c1_i32_3 = arith.constant 1 : i32
    %4 = arith.muli %arg0, %c1_i32_3 : i32
    %5 = arith.addi %4, %arg1 : i32
    %6 = arith.minsi %5, %3 : i32
    %c0_i32 = arith.constant 0 : i32
    %c0_i32_4 = arith.constant 0 : i32
    return %6, %c0_i32 : i32, i32
  }
  func.func @transform_1(%arg0: i32, %arg1: i32) -> (i32, i32) {
    %c1_i32 = arith.constant 1 : i32
    %0 = arith.addi %arg0, %c1_i32 : i32
    %c1_i32_0 = arith.constant 1 : i32
    %1 = arith.muli %0, %c1_i32_0 : i32
    %c1_i32_1 = arith.constant 1 : i32
    %2 = arith.minsi %1, %c1_i32_1 : i32
    %c1_i32_2 = arith.constant 1 : i32
    %3 = arith.subi %2, %c1_i32_2 : i32
    %c1_i32_3 = arith.constant 1 : i32
    %4 = arith.muli %arg0, %c1_i32_3 : i32
    %5 = arith.addi %4, %arg1 : i32
    %6 = arith.minsi %5, %3 : i32
    %c0_i32 = arith.constant 0 : i32
    %c0_i32_4 = arith.constant 0 : i32
    return %6, %c0_i32 : i32, i32
  }
  func.func @transform_2(%arg0: i32, %arg1: i32) -> (i32, i32) {
    %c0_i32 = arith.constant 0 : i32
    %c0_i32_0 = arith.constant 0 : i32
    return %arg0, %c0_i32 : i32, i32
  }
}

</mosaic_0001>

<bundles_post_ra>
// kernel: tpu_custom_call.1
= control target key start
LH: loop header
LB: loop body
LE: loop exit
PB: predicated region body
PF: predicated region fallthrough
CT: control target
= control target key end

     0   :  { %7 = vsyncpa [#allocation3], 0  ;;  %s320_s0 = inlined_call_operand.hbm [shape: f32[16,128], index: 0, kind: input, shape index: {}]   ;;  %s321_s1 = inlined_call_operand.hbm [shape: f32[16,128], index: 1, kind: input, shape index: {}]   ;;  %s322_s2 = inlined_call_operand.hbm [shape: f32[8,128], index: 2, kind: output, shape index: {}]  }
   0x1   :  { %8 = vsyncpa [#allocation6], 0 }
   0x2   :  { %9 = vsyncpa [#allocation4], 0  ;;  %s263_s9 = smov [#allocation2]   ;;  %s191_s13 = scalar_lea.hbm %s320_s0, 256 }
   0x3   :  { %s25_s10 = sshll.u32 %s263_s9, 4  ;;  %p192_p0 = scmp.ne.s32.totalorder %s320_s0, %s191_s13  ;;  %s26_s10 = int_to_ptr.vmem [resolvable:$true] %s25_s10 }
   0x4   :  { %p195_p1 = scmp.lt.u32.totalorder %s191_s13, %s320_s0 }
   0x6   :  { %p197_p2 = pnand %p195_p1, %p192_p0 }
   0x8   :  { %200 = shalt.err (!%p197_p2)
}
   0x9   :  { %s201_s18 = scalar_lea.vmem %s26_s10, 256  ;;  %p206_p4 = scmp.lt.s32.totalorder %s26_s10, %s26_s10 }
   0xa   :  { %p202_p3 = scmp.ne.s32.totalorder %s26_s10, %s201_s18  ;;  %p207_p5 = scmp.lt.s32.totalorder %s201_s18, %s201_s18 }
   0xc   :  { %p208_p6 = por %p207_p5, %p206_p4 }
   0xe   :  { %p209_p7 = pnand %p208_p6, %p202_p3 }
  0x10   :  { %212 = shalt.err (!%p209_p7)
}
  0x11   :  { %s264_s19 = smov 128   ;;  %s265_s20 = smov 8  }
  0x12   :  { %31 = dma.hbm_to_vmem [thread:$0]  %s320_s0, 256, %s26_s10, [#allocation3], %s264_s19, %s264_s19, %s265_s20  }
  0x13   :  { %s266_s23 = smov [#allocation5]   ;;  %s213_s27 = scalar_lea.hbm %s321_s1, 256 }
  0x14   :  { %s47_s24 = sshll.u32 %s266_s23, 4  ;;  %p214_p8 = scmp.ne.s32.totalorder %s321_s1, %s213_s27  ;;  %s48_s24 = int_to_ptr.vmem [resolvable:$true] %s47_s24 }
  0x15   :  { %p217_p9 = scmp.lt.u32.totalorder %s213_s27, %s321_s1 }
  0x17   :  { %p219_p10 = pnand %p217_p9, %p214_p8 }
  0x19   :  { %222 = shalt.err (!%p219_p10)
}
  0x1a   :  { %s223_s4 = scalar_lea.vmem %s48_s24, 256  ;;  %p228_p12 = scmp.lt.s32.totalorder %s48_s24, %s48_s24 }
  0x1b   :  { %p224_p11 = scmp.ne.s32.totalorder %s48_s24, %s223_s4  ;;  %p229_p13 = scmp.lt.s32.totalorder %s223_s4, %s223_s4 }
  0x1d   :  { %p230_p0 = por %p229_p13, %p228_p12 }
  0x1f   :  { %p231_p1 = pnand %p230_p0, %p224_p11 }
  0x21   :  { %234 = shalt.err (!%p231_p1)
}
  0x22   :  { %53 = dma.hbm_to_vmem [thread:$0]  %s321_s1, 256, %s48_s24, [#allocation6], %s264_s19, %s264_s19, %s265_s20  }
  0x23   :  { %257 = dma.done.wait [#allocation3], 256  }
  0x24   :  { %258 = vsyncadd [#allocation3], 4294967040 }
  0x25   :  { %259 = dma.done.wait [#allocation6], 256  }
  0x26   :  { %260 = vsyncadd [#allocation6], 4294967040  ;;  %v267_v0 = vmov 0.0   ;;  %v88_v1 = vld [vmem:[#allocation2] sm:$0xff]  ;;  %v89_v2 = vld [vmem:[#allocation2 + $0x8] sm:$0xff]  ;;  %s268_s1 = smov [#allocation7]  }
  0x27   :  { %80 = vst [vmem:[#allocation7] sm:$0xff] %v267_v0  ;;  %v90_v3 = vld [vmem:[#allocation5] sm:$0xff]  ;;  %v91_v4 = vld [vmem:[#allocation5 + $0x8] sm:$0xff]  ;;  %s171_s6 = sshll.u32 %s268_s1, 4  ;;  %s172_s6 = int_to_ptr.vmem [resolvable:$true] %s171_s6 }
  0x28   :  { %v92_v5 = vmul.f32 %v90_v3, %v88_v1  ;;  %v101_v6 = vadd.f32 %v90_v3, %v88_v1  ;;  %v93_v7 = vmul.f32 %v91_v4, %v89_v2  ;;  %v102_v8 = vadd.f32 %v91_v4, %v89_v2  ;;  %s235_s7 = scalar_lea.vmem %s172_s6, 128  ;;  %p240_p3 = scmp.lt.s32.totalorder %s172_s6, %s172_s6 }
  0x29   :  { %p236_p2 = scmp.ne.s32.totalorder %s172_s6, %s235_s7  ;;  %p241_p4 = scmp.lt.s32.totalorder %s235_s7, %s235_s7 }
  0x2a   :  { %v94_v9 = vadd.f32 %v93_v7, %v92_v5  ;;  %v103_v10 = vadd.f32 %v102_v8, %v101_v6 }
  0x2b   :  { %p242_p5 = por %p241_p4, %p240_p3 }
  0x2c   :  { %v95_v11 = vrot.slane %v94_v9, 4  ;;  %v104_v12 = vrot.slane %v103_v10, 4 }
  0x2d   :  { %p243_p6 = pnand %p242_p5, %p236_p2 }
  0x2e   :  { %v96_v13 = vadd.f32 %v95_v11, %v94_v9  ;;  %v105_v14 = vadd.f32 %v104_v12, %v103_v10  ;;  %v112_v21 = vld [vmem:[#allocation7] sm:$0x1]  ;;  %v115_v22 = vld [vmem:[#allocation7 + $0x1] sm:$0x1] }
  0x30   :  { %v97_v15 = vrot.slane %v96_v13, 2  ;;  %v106_v16 = vrot.slane %v105_v14, 2 }
  0x32   :  { %v98_v17 = vadd.f32 %v97_v15, %v96_v13  ;;  %v107_v18 = vadd.f32 %v106_v16, %v105_v14 }
  0x34   :  { %v99_v19 = vrot.slane %v98_v17, 1  ;;  %v108_v20 = vrot.slane %v107_v18, 1 }
  0x36   :  { %v100_v23 = vadd.f32 %v99_v19, %v98_v17  ;;  %v109_v24 = vadd.f32 %v108_v20, %v107_v18 }
  0x38   :  { %v113_v25 = vadd.f32 %v112_v21, %v100_v23  ;;  %v116_v26 = vadd.f32 %v115_v22, %v109_v24 }
  0x3a   :  { %114 = vst [vmem:[#allocation7] sm:$0x1] %v113_v25  ;;  %117 = vst [vmem:[#allocation7 + $0x1] sm:$0x1] %v116_v26 }
  0x3b   :  { %246 = shalt.err (!%p243_p6)
}
  0x3c   :  { %s247_s10 = scalar_lea.hbm %s322_s2, 128 }
  0x3d   :  { %p248_p7 = scmp.ne.s32.totalorder %s322_s2, %s247_s10  ;;  %p251_p8 = scmp.lt.u32.totalorder %s247_s10, %s322_s2 }
  0x3f   :  { %p253_p9 = pnand %p251_p8, %p248_p7 }
  0x41   :  { %256 = shalt.err (!%p253_p9)
}
  0x42   :  { %174 = dma.vmem_to_hbm [thread:$0]  %s172_s6, 128, %s322_s2, [#allocation4]  }
  0x43   :  { %261 = dma.done.wait [#allocation4], 128  }
  0x44   :  { %262 = vsyncadd [#allocation4], 4294967168 }
  0x45   :  { %178 = vsyncpa [#allocation3], 1 }
  0x46   :  { %179 = vsyncpa [#allocation6], 1 }
  0x47   :  { %180 = vsyncpa [#allocation4], 1 }

</bundles_post_ra>
